<compile_context>
chip_gen: v5e
topology: v5e:2x2
jax: 0.10.0
libtpu: 0.0.40
codegen_flags: <defaults>
</compile_context>

<pallas_src>
import functools
import math

import jax
import jax.numpy as jnp
from jax import lax
from jax.experimental import pallas as pl
from jax.experimental.pallas import tpu as pltpu

ALPHA = 0.25
GAMMA = 2.0

_LANE = 128
_SUBLANE = 8
_ROW_ALIGN = 16           # multiple of 16 so bf16 inputs pack cleanly along sublanes
_MAX_TILE_ROWS = 4096     # 4096 x 128 x 4B = 2 MiB per f32 input block
_PAD_LOGIT = -1.0e4       # exp(-|x|) underflows to 0 -> padded elements give exactly 0 loss


def _focal_elementwise(x, t, gamma):
    """Per-element focal term (without alpha): ce * (1 - p_t)**gamma, in f32."""
    x = x.astype(jnp.float32)
    t = t.astype(jnp.float32)
    # Shared transcendental: e = exp(-|x|) serves both the stable BCE and the sigmoid.
    e = jnp.exp(-jnp.abs(x))
    # Numerically stable BCE-with-logits: max(x,0) - x*t + log(1 + exp(-|x|))
    ce = jnp.maximum(x, 0.0) - x * t + jnp.log1p(e)
    # sigmoid(x) = 1/(1+e) for x >= 0, e/(1+e) for x < 0   (reuses e)
    p = jnp.where(x >= 0.0, 1.0, e) / (1.0 + e)
    p_t = p * t + (1.0 - p) * (1.0 - t)
    m = 1.0 - p_t
    g = float(gamma)
    if g == 2.0:
        mod = m * m                       # VPU square instead of EUP exp(g*log(m))
    elif g.is_integer() and g >= 0.0:
        mod = lax.integer_pow(m, int(g))
    else:
        mod = m ** g
    return ce * mod


def _focal_sum_kernel(x_ref, t_ref, partial_ref, *, gamma, rows_valid, mask_rows):
    loss = _focal_elementwise(x_ref[...], t_ref[...], gamma)
    tile_rows = loss.shape[0]
    if mask_rows:
        # The last grid block may read past the true row extent (large inputs are
        # not padded in the wrapper); zero those rows before the partial reduce.
        row_ids = lax.broadcasted_iota(jnp.int32, (tile_rows, _LANE), 0)
        row_ids = row_ids + pl.program_id(0) * tile_rows
        loss = jnp.where(row_ids < rows_valid, loss, 0.0)
    # vreg-shaped partial sum: cheap VPU adds only; the cross-lane/sublane reduce,
    # alpha scale and 1/count divide are paid exactly once, outside the kernel.
    partial_ref[...] = loss.reshape(tile_rows // _SUBLANE, _SUBLANE, _LANE).sum(axis=0)


def _focal_none_kernel(x_ref, t_ref, o_ref, *, gamma, alpha):
    loss = _focal_elementwise(x_ref[...], t_ref[...], gamma)
    o_ref[...] = (jnp.float32(alpha) * loss).astype(o_ref.dtype)


def _plan(total, max_tile_rows):
    rows = -(-total // _LANE)                       # lane-dense rows of 128
    if rows <= max_tile_rows:
        # Single block: pad rows up to a 16-aligned tile (tiny array -> cheap pad).
        tile_rows = -(-rows // _ROW_ALIGN) * _ROW_ALIGN
        padded_rows = tile_rows
        mask_rows = False
    else:
        # Multi-block: never row-pad (avoids a full-array HBM copy); mask in-kernel
        # only when the last block is partial.
        tile_rows = max_tile_rows
        padded_rows = rows
        mask_rows = (rows % tile_rows) != 0
    num_blocks = -(-padded_rows // tile_rows)
    return rows, tile_rows, padded_rows, num_blocks, mask_rows


def focal_loss(logits, targets, *, alpha=ALPHA, gamma=GAMMA, reduction="mean",
               max_tile_rows=_MAX_TILE_ROWS):
    """Binary focal loss with logits (matches the PyTorch FocalLoss.forward)."""
    assert logits.shape == targets.shape
    if reduction not in ("mean", "sum", "none"):
        raise ValueError("reduction must be 'mean', 'sum' or 'none'")

    orig_shape = logits.shape
    total = math.prod(orig_shape) if orig_shape else 1
    x = logits.reshape(-1)
    t = targets.reshape(-1)

    rows, tile_rows, padded_rows, num_blocks, mask_rows = _plan(total, max_tile_rows)

    pad = padded_rows * _LANE - total
    if pad:
        x = jnp.pad(x, (0, pad), constant_values=_PAD_LOGIT)
        t = jnp.pad(t, (0, pad), constant_values=0)
    x2 = x.reshape(padded_rows, _LANE)
    t2 = t.reshape(padded_rows, _LANE)

    in_specs = [
        pl.BlockSpec((tile_rows, _LANE), lambda i: (i, 0)),
        pl.BlockSpec((tile_rows, _LANE), lambda i: (i, 0)),
    ]
    cparams = pltpu.CompilerParams(
        dimension_semantics=("parallel",),      # independent per-block work
        vmem_limit_bytes=32 * 1024 * 1024,      # safe on v5e / v6e / v7x
    )

    if reduction == "none":
        out_dtype = jnp.result_type(logits.dtype, targets.dtype)
        if not jnp.issubdtype(out_dtype, jnp.floating):
            out_dtype = jnp.float32
        kernel = functools.partial(_focal_none_kernel, gamma=float(gamma), alpha=float(alpha))
        out = pl.pallas_call(
            kernel,
            out_shape=jax.ShapeDtypeStruct((padded_rows, _LANE), out_dtype),
            grid=(num_blocks,),
            in_specs=in_specs,
            out_specs=pl.BlockSpec((tile_rows, _LANE), lambda i: (i, 0)),
            compiler_params=cparams,
        )(x2, t2)
        out = out.reshape(-1)
        if pad:
            out = out[:total]
        return out.reshape(orig_shape)

    kernel = functools.partial(_focal_sum_kernel, gamma=float(gamma),
                               rows_valid=rows, mask_rows=mask_rows)
    partials = pl.pallas_call(
        kernel,
        out_shape=jax.ShapeDtypeStruct((num_blocks * _SUBLANE, _LANE), jnp.float32),
        grid=(num_blocks,),
        in_specs=in_specs,
        out_specs=pl.BlockSpec((_SUBLANE, _LANE), lambda i: (i, 0)),
        compiler_params=cparams,
    )(x2, t2)

    s = jnp.sum(partials) * jnp.float32(alpha)
    if reduction == "mean":
        return s / jnp.float32(total)
    return s


def focal_loss_ref(logits, targets, alpha=ALPHA, gamma=GAMMA, reduction="mean"):
    p = jax.nn.sigmoid(logits)
    ce = jnp.maximum(logits, 0.0) - logits * targets + jnp.log1p(jnp.exp(-jnp.abs(logits)))
    p_t = p * targets + (1.0 - p) * (1.0 - targets)
    loss = ce * (alpha * (1.0 - p_t) ** gamma)
    if reduction == "mean":
        return loss.mean()
    if reduction == "sum":
        return loss.sum()
    return loss


if __name__ == "__main__":
    key = jax.random.PRNGKey(0)
    k1, k2, k3, k4, k5, k6 = jax.random.split(key, 6)

    # Small per-pixel binary prediction head (NCHW).
    shape = (2, 4, 16, 16)
    logits = jax.random.normal(k1, shape, dtype=jnp.float32) * 2.0
    targets = jax.random.bernoulli(k2, p=0.3, shape=shape).astype(jnp.float32)

    out = jax.block_until_ready(focal_loss(logits, targets))
    ref = focal_loss_ref(logits, targets)
    assert jnp.allclose(out, ref, rtol=1e-5, atol=1e-6), (out, ref)

    out_sum = jax.block_until_ready(focal_loss(logits, targets, reduction="sum"))
    ref_sum = focal_loss_ref(logits, targets, reduction="sum")
    assert jnp.allclose(out_sum, ref_sum, rtol=1e-5, atol=1e-5), (out_sum, ref_sum)

    out_none = jax.block_until_ready(focal_loss(logits, targets, reduction="none"))
    ref_none = focal_loss_ref(logits, targets, reduction="none")
    assert out_none.shape == shape
    assert jnp.allclose(out_none, ref_none, rtol=1e-5, atol=1e-6)

    # Shape not divisible by 128 -> exercises the lane-pad path.
    shape2 = (2, 3, 7, 5)
    logits2 = jax.random.normal(k3, shape2, dtype=jnp.float32) * 2.0
    targets2 = jax.random.bernoulli(k4, p=0.3, shape=shape2).astype(jnp.float32)
    out2 = jax.block_until_ready(focal_loss(logits2, targets2))
    ref2 = focal_loss_ref(logits2, targets2)
    assert jnp.allclose(out2, ref2, rtol=1e-5, atol=1e-6), (out2, ref2)

    # Multi-block grid with a partial (row-masked) last block, exercised at a
    # small size by shrinking the per-block row budget.
    shape3 = (2, 4, 16, 20)   # 2560 elems -> 20 rows of 128 -> 2 blocks of 16 rows
    logits3 = jax.random.normal(k5, shape3, dtype=jnp.float32) * 2.0
    targets3 = jax.random.bernoulli(k6, p=0.3, shape=shape3).astype(jnp.float32)
    out3 = jax.block_until_ready(focal_loss(logits3, targets3, max_tile_rows=16))
    ref3 = focal_loss_ref(logits3, targets3)
    assert jnp.allclose(out3, ref3, rtol=1e-5, atol=1e-6), (out3, ref3)

    print("KERNEL_OK")
</pallas_src>

<mosaic_0001>
module attributes {stable_mosaic.version = 11 : i64} {
  func.func @_focal_sum_kernel(%arg0: i32, %arg1: memref<16x128xf32, #tpu.memory_space<vmem>>, %arg2: memref<16x128xf32, #tpu.memory_space<vmem>>, %arg3: memref<8x128xf32, #tpu.memory_space<vmem>>) attributes {dimension_semantics = [#tpu.dimension_semantics<parallel>], iteration_bounds = array<i64: 1>, scalar_prefetch = 0 : i64, scratch_operands = 0 : i64, tpu.core_type = #tpu.core_type<tc>, window_params = [{transform_indices = @transform_0, window_bounds = array<i64: 16, 128>}, {transform_indices = @transform_1, window_bounds = array<i64: 16, 128>}, {transform_indices = @transform_2, window_bounds = array<i64: 8, 128>}]} {
    %c0 = arith.constant 0 : index
    %c0_0 = arith.constant 0 : index
    %0 = vector.load %arg1[%c0, %c0_0] : memref<16x128xf32, #tpu.memory_space<vmem>>, vector<16x128xf32>
    %c0_1 = arith.constant 0 : index
    %c0_2 = arith.constant 0 : index
    %1 = vector.load %arg2[%c0_1, %c0_2] : memref<16x128xf32, #tpu.memory_space<vmem>>, vector<16x128xf32>
    %2 = math.absf %0 : vector<16x128xf32>
    %cst = arith.constant 0.000000e+00 : f32
    %3 = vector.broadcast %cst : f32 to vector<16x128xf32>
    %4 = arith.subf %3, %2 : vector<16x128xf32>
    %5 = math.exp %4 : vector<16x128xf32>
    %cst_3 = arith.constant 0.000000e+00 : f32
    %6 = vector.broadcast %cst_3 : f32 to vector<16x128xf32>
    %7 = arith.maximumf %0, %6 : vector<16x128xf32>
    %8 = arith.mulf %0, %1 : vector<16x128xf32>
    %9 = arith.subf %7, %8 : vector<16x128xf32>
    %10 = math.log1p %5 : vector<16x128xf32>
    %11 = arith.addf %9, %10 : vector<16x128xf32>
    %cst_4 = arith.constant 0.000000e+00 : f32
    %12 = vector.broadcast %cst_4 : f32 to vector<16x128xf32>
    %13 = arith.cmpf oge, %0, %12 : vector<16x128xf32>
    %cst_5 = arith.constant 1.000000e+00 : f32
    %14 = vector.broadcast %cst_5 : f32 to vector<16x128xf32>
    %15 = arith.select %13, %14, %5 : vector<16x128xi1>, vector<16x128xf32>
    %cst_6 = arith.constant 1.000000e+00 : f32
    %16 = vector.broadcast %cst_6 : f32 to vector<16x128xf32>
    %17 = arith.addf %16, %5 : vector<16x128xf32>
    %18 = arith.divf %15, %17 : vector<16x128xf32>
    %19 = arith.mulf %18, %1 : vector<16x128xf32>
    %cst_7 = arith.constant 1.000000e+00 : f32
    %20 = vector.broadcast %cst_7 : f32 to vector<16x128xf32>
    %21 = arith.subf %20, %18 : vector<16x128xf32>
    %cst_8 = arith.constant 1.000000e+00 : f32
    %22 = vector.broadcast %cst_8 : f32 to vector<16x128xf32>
    %23 = arith.subf %22, %1 : vector<16x128xf32>
    %24 = arith.mulf %21, %23 : vector<16x128xf32>
    %25 = arith.addf %19, %24 : vector<16x128xf32>
    %cst_9 = arith.constant 1.000000e+00 : f32
    %26 = vector.broadcast %cst_9 : f32 to vector<16x128xf32>
    %27 = arith.subf %26, %25 : vector<16x128xf32>
    %28 = arith.mulf %27, %27 : vector<16x128xf32>
    %29 = arith.mulf %11, %28 : vector<16x128xf32>
    %30 = vector.shape_cast %29 : vector<16x128xf32> to vector<2x8x128xf32>
    %cst_10 = arith.constant dense<0.000000e+00> : vector<8x128xf32>
    %31 = vector.multi_reduction <add>, %30, %cst_10 [0] : vector<2x8x128xf32> to vector<8x128xf32>
    %c0_11 = arith.constant 0 : index
    %c0_12 = arith.constant 0 : index
    %32 = vector.load %arg3[%c0_11, %c0_12] : memref<8x128xf32, #tpu.memory_space<vmem>>, vector<8x128xf32>
    tpu.vector_store %arg3[%c0_11, %c0_12], %31 {strides = array<i32>} : memref<8x128xf32, #tpu.memory_space<vmem>>, vector<8x128xf32>,
    return
  }
  func.func @transform_0(%arg0: i32) -> (i32, i32) {
    %c0_i32 = arith.constant 0 : i32
    %c0_i32_0 = arith.constant 0 : i32
    return %arg0, %c0_i32 : i32, i32
  }
  func.func @transform_1(%arg0: i32) -> (i32, i32) {
    %c0_i32 = arith.constant 0 : i32
    %c0_i32_0 = arith.constant 0 : i32
    return %arg0, %c0_i32 : i32, i32
  }
  func.func @transform_2(%arg0: i32) -> (i32, i32) {
    %c0_i32 = arith.constant 0 : i32
    %c0_i32_0 = arith.constant 0 : i32
    return %arg0, %c0_i32 : i32, i32
  }
}

</mosaic_0001>

<bundles_post_ra>
// kernel: tpu_custom_call.1
= control target key start
LH: loop header
LB: loop body
LE: loop exit
PB: predicated region body
PF: predicated region fallthrough
CT: control target
= control target key end

     0   :  { %7 = vsyncpa [#allocation3], 0  ;;  %s322_s0 = inlined_call_operand.hbm [shape: f32[16,128], index: 0, kind: input, shape index: {}]   ;;  %s323_s1 = inlined_call_operand.hbm [shape: f32[16,128], index: 1, kind: input, shape index: {}]   ;;  %s324_s2 = inlined_call_operand.hbm [shape: f32[8,128], index: 2, kind: output, shape index: {}]  }
   0x1   :  { %8 = vsyncpa [#allocation6], 0 }
   0x2   :  { %9 = vsyncpa [#allocation4], 0  ;;  %s14_s11 = sshll.u32 %s322_s0, 4  ;;  %s249_s12 = smov [#allocation2]   ;;  %s15_s11 = int_to_ptr.hbm [resolvable:$true] %s14_s11 }
   0x3   :  { %s16_s13 = sshll.u32 %s249_s12, 4  ;;  %s27_s16 = sshll.u32 %s323_s1, 4  ;;  %s17_s13 = int_to_ptr.vmem [resolvable:$true] %s16_s13  ;;  %s28_s16 = int_to_ptr.hbm [resolvable:$true] %s27_s16 }
   0x4   :  { %s250_s17 = smov 128   ;;  %s251_s18 = smov 8  }
   0x5   :  { %22 = dma.hbm_to_vmem [thread:$0]  %s15_s11, 256, %s17_s13, [#allocation3], %s250_s17, %s250_s17, %s251_s18  }
   0x6   :  { %s252_s19 = smov [#allocation5]  }
   0x7   :  { %s29_s20 = sshll.u32 %s252_s19, 4  ;;  %s30_s20 = int_to_ptr.vmem [resolvable:$true] %s29_s20 }
   0x8   :  { %35 = dma.hbm_to_vmem [thread:$0]  %s28_s16, 256, %s30_s20, [#allocation6], %s250_s17, %s250_s17, %s251_s18  }
   0x9   :  { %243 = dma.done.wait [#allocation3], 256  }
   0xa   :  { %244 = vsyncadd [#allocation3], 4294967040 }
   0xb   :  { %245 = dma.done.wait [#allocation6], 256  }
   0xc   :  { %246 = vsyncadd [#allocation6], 4294967040  ;;  %v275_v0 = vld [vmem:[#allocation2] sm:$0xff]  ;;  %v277_v1 = vld [vmem:[#allocation2 + $0x8] sm:$0xff]  ;;  %s253_s0 = smov [#allocation7]   ;;  %s143_s23 = sshll.u32 %s324_s2, 4  ;;  %s144_s23 = int_to_ptr.hbm [resolvable:$true] %s143_s23 }
   0xd   :  { %v48_v2 = vand.u32 2147483647, %v275_v0  ;;  %v49_v3 = vand.u32 2147483647, %v277_v1  ;;  %v46_v23 = vld [vmem:[#allocation5] sm:$0xff]  ;;  %v56_v24 = vmax.f32 %v275_v0, 0.0 }
   0xe   :  { %vm82_vm4 = vcmp.ge.f32.partialorder %v275_v0, 0.0  ;;  %v58_v27 = vmul.f32 %v46_v23, %v275_v0  ;;  %vm83_vm5 = vcmp.ge.f32.partialorder %v277_v1, 0.0  ;;  %v47_v37 = vld [vmem:[#allocation5 + $0x8] sm:$0xff]  ;;  %v57_v41 = vmax.f32 %v277_v1, 0.0  ;;  %s141_s1 = sshll.u32 %s253_s0, 4  ;;  %s142_s1 = int_to_ptr.vmem [resolvable:$true] %s141_s1 }
   0xf   :  { %v50_v4 = vsub.f32 0.0, %v48_v2  ;;  %v51_v5 = vsub.f32 0.0, %v49_v3  ;;  %v59_v45 = vmul.f32 %v47_v37, %v277_v1  ;;  %v122_v51 = vsub.f32 1.0, %v46_v23 }
  0x10   :  { %v123_v52 = vsub.f32 1.0, %v47_v37  ;;  %v60_v63 = vsub.f32 %v56_v24, %v58_v27 }
  0x11   :  { %v52_v6 = vmul.f32 1.442695, %v50_v4  ;;  %v54_v7 = vmul.f32 1.442695, %v51_v5  ;;  %v61_v1 = vsub.f32 %v57_v41, %v59_v45 }
  0x13   :  { %159 = vpow2.f32 %v52_v6 }
  0x14   :  { %161 = vpow2.f32 %v54_v7 }
  0x19   :  { %v160_v8 = vpop.eup %159 }
  0x1a   :  { %v281_v9 = vpop.eup %161  ;;  %v62_v10 = vadd.f32 1.0, %v160_v8  ;;  %v65_v14 = vmul.f32 -0.5, %v160_v8  ;;  %v68_v32 = vand.u32 2147483647, %v160_v8  ;;  %v84_v39 = vsel %vm82_vm4, 1.0, %v160_v8 }
  0x1b   :  { %v71_v11 = vadd.f32 1.0, %v281_v9  ;;  %v74_v25 = vmul.f32 -0.5, %v281_v9  ;;  %v85_v43 = vsel %vm83_vm5, 1.0, %v281_v9  ;;  %v77_v46 = vand.u32 2147483647, %v281_v9 }
  0x1c   :  { %163 = vrcp.f32 %v62_v10  ;;  %vm93_vm0 = vweird.f32 %v62_v10  ;;  %v99_v16 = vand.u32 2147483648, %v62_v10  ;;  %v97_v19 = vand.u32 2147483647, %v62_v10 }
  0x1d   :  { %165 = vrcp.f32 %v71_v11  ;;  %v114_v20 = vand.u32 2147483648, %v71_v11  ;;  %vm108_vm2 = vweird.f32 %v71_v11  ;;  %v112_v22 = vand.u32 2147483647, %v71_v11 }
  0x1e   :  { %167 = vlog2.f32 %v62_v10  ;;  %v100_v29 = vor.u32 1.1754944e-38, %v99_v16  ;;  %vm98_vm7 = vcmp.eq.f32.partialorder %v97_v19, 8.507059e+37  ;;  %v66_v38 = vadd.f32 1.0, %v65_v14 }
  0x1f   :  { %169 = vlog2.f32 %v71_v11  ;;  %v115_v35 = vor.u32 1.1754944e-38, %v114_v20  ;;  %vm113_vm9 = vcmp.eq.f32.partialorder %v112_v22, 8.507059e+37  ;;  %v75_v42 = vadd.f32 1.0, %v74_v25 }
  0x20   :  { %v67_v54 = vmul.f32 %v160_v8, %v66_v38  ;;  %vm312_vm10 = vcmp.lt.f32.partialorder %v68_v32, 0.0004427343  ;;  %vm78_vm11 = vcmp.lt.f32.partialorder %v77_v46, 0.0004427343 }
  0x21   :  { %v76_v58 = vmul.f32 %v281_v9, %v75_v42 }
  0x22   :  { %v164_v12 = vpop.eup %163 }
  0x23   :  { %v166_v13 = vpop.eup %165  ;;  %v89_v15 = vmul.f32 %v164_v12, %v62_v10  ;;  %vm94_vm1 = vweird.f32 %v164_v12 }
  0x24   :  { %v104_v17 = vmul.f32 %v166_v13, %v71_v11  ;;  %vm109_vm3 = vweird.f32 %v166_v13  ;;  %vm290_vm6 = vmor %vm93_vm0, %vm94_vm1  ;;  %v168_v31 = vpop.eup %167 }
  0x25   :  { %v90_v18 = vsub.f32 1.0, %v89_v15  ;;  %vm296_vm8 = vmor %vm108_vm2, %vm109_vm3  ;;  %v170_v36 = vpop.eup %169  ;;  %v64_v53 = vmul.f32 0.6931472, %v168_v31 }
  0x26   :  { %v105_v21 = vsub.f32 1.0, %v104_v17  ;;  %v73_v57 = vmul.f32 0.6931472, %v170_v36 }
  0x27   :  { %v91_v26 = vmul.f32 %v164_v12, %v90_v18  ;;  %v70_v2 = vsel %vm312_vm10, %v67_v54, %v64_v53 }
  0x28   :  { %v106_v30 = vmul.f32 %v166_v13, %v105_v21  ;;  %v79_v4 = vsel %vm78_vm11, %v76_v58, %v73_v57  ;;  %v80_v7 = vadd.f32 %v70_v2, %v60_v63 }
  0x29   :  { %v92_v33 = vadd.f32 %v164_v12, %v91_v26  ;;  %v81_v10 = vadd.f32 %v79_v4, %v61_v1 }
  0x2a   :  { %v107_v40 = vadd.f32 %v166_v13, %v106_v30 }
  0x2b   :  { %v96_v44 = vsel %vm290_vm6, %v164_v12, %v92_v33 }
  0x2c   :  { %v101_v47 = vsel %vm98_vm7, %v100_v29, %v96_v44  ;;  %v111_v48 = vsel %vm296_vm8, %v166_v13, %v107_v40 }
  0x2d   :  { %v102_v49 = vmul.f32 %v101_v47, %v84_v39  ;;  %v116_v50 = vsel %vm113_vm9, %v115_v35, %v111_v48 }
  0x2e   :  { %v117_v56 = vmul.f32 %v116_v50, %v85_v43 }
  0x2f   :  { %v118_v59 = vmul.f32 %v102_v49, %v46_v23  ;;  %v120_v60 = vsub.f32 1.0, %v102_v49 }
  0x30   :  { %v119_v61 = vmul.f32 %v117_v56, %v47_v37  ;;  %v121_v62 = vsub.f32 1.0, %v117_v56 }
  0x31   :  { %v124_v0 = vmul.f32 %v122_v51, %v120_v60 }
  0x32   :  { %v125_v3 = vmul.f32 %v123_v52, %v121_v62 }
  0x33   :  { %v126_v5 = vadd.f32 %v124_v0, %v118_v59 }
  0x34   :  { %v127_v6 = vadd.f32 %v125_v3, %v119_v61 }
  0x35   :  { %v128_v8 = vsub.f32 1.0, %v126_v5 }
  0x36   :  { %v129_v11 = vsub.f32 1.0, %v127_v6 }
  0x37   :  { %v130_v9 = vmul.f32 %v128_v8, %v128_v8 }
  0x38   :  { %v131_v12 = vmul.f32 %v129_v11, %v129_v11 }
  0x39   :  { %v132_v13 = vmul.f32 %v130_v9, %v80_v7 }
  0x3a   :  { %v133_v14 = vmul.f32 %v131_v12, %v81_v10 }
  0x3c   :  { %v134_v15 = vadd.f32 %v133_v14, %v132_v13 }
  0x3e   :  { %135 = vst [vmem:[#allocation7] sm:$0xff] %v134_v15 }
  0x3f   :  { %146 = dma.vmem_to_hbm [thread:$0]  %s142_s1, 128, %s144_s23, [#allocation4]  }
  0x40   :  { %247 = dma.done.wait [#allocation4], 128  }
  0x41   :  { %248 = vsyncadd [#allocation4], 4294967168 }
  0x42   :  { %151 = vsyncpa [#allocation3], 1 }
  0x43   :  { %152 = vsyncpa [#allocation6], 1 }
  0x44   :  { %153 = vsyncpa [#allocation4], 1 }

</bundles_post_ra>
